<compile_context>
chip_gen: v7x
topology: tpu7x:2x2x1
jax: 0.10.0
libtpu: 0.0.40
codegen_flags: <defaults>
</compile_context>

<pallas_src>
import functools

import jax
import jax.numpy as jnp
from jax.experimental import pallas as pl
from jax.experimental.pallas import tpu as pltpu


def _round_up(x, m):
    return ((x + m - 1) // m) * m


def _choose_batch_tile(B, N, F, dtype_bytes, *, target_rows=4096,
                       x_buffer_budget=12 * 1024 * 1024):
    """Batches per grid step.

    Targets ~4K flattened M-rows per step (amortizes the ~0.35us per-step
    overhead) subject to a per-x-tile VMEM budget that stays double-buffer
    safe on v7x (64 MiB VMEM).  Returns either B itself (single / clean tile)
    or a multiple of 8 so the (bt*N, F) input block and (bt, O) output block
    stay sublane-aligned.
    """
    bytes_per_batch = 2 * N * F * dtype_bytes          # double-buffered x rows
    max_bt_vmem = max(1, x_buffer_budget // max(1, bytes_per_batch))
    cap = min(B, max_bt_vmem, max(1, target_rows // max(1, N)))
    if cap >= B:
        # Whole batch fits in one step; still prefer 2 steps when B splits into
        # sublane-aligned halves so v7x's two TensorCores both get work.
        half = B // 2
        if B % 2 == 0 and half % 8 == 0:
            return half
        return B
    # Largest multiple of 8 that divides B (no ragged tile, no masked stores).
    bt = (cap // 8) * 8
    while bt >= 8:
        if B % bt == 0:
            return bt
        bt -= 8
    if cap >= 8:
        # No aligned divisor: largest aligned tile; Pallas handles the ragged
        # final block (out-of-range output rows are simply not written back).
        return (cap // 8) * 8
    # Extreme case (single batch bigger than the budget): fall back to the
    # smallest legal tile; correctness is unaffected.
    return max(1, cap)


def _graph_agg_kernel(x_ref, w_ref, b_ref, o_ref, *, n_nodes, out_dim, use_tanh):
    # x_ref: (bt*N, F)   flattened batch tile (real F, no padding)
    # w_ref: (F, Wcols)  packed [0.5*Ws | Wt | 0]  (resident)
    # b_ref: (1, Wcols)  packed [0.5*bs | bt | 0]  (resident)
    # o_ref: (bt, O)
    rows = x_ref.shape[0]
    bt = rows // n_nodes

    z = jnp.dot(x_ref[...], w_ref[...],
                preferred_element_type=jnp.float32,
                precision=jax.lax.Precision.HIGHEST)
    z = z + b_ref[...]                                   # (bt*N, Wcols), f32

    # sigmoid(a) == 0.5 * (1 + tanh(a/2)); the sigmoid half of the packed
    # weight/bias is pre-scaled by 0.5 in the wrapper, so ONE tanh pass over
    # the slab covers both activations (halves EUP work vs. sigmoid + tanh).
    t = jnp.tanh(z)
    i = 0.5 * t[:, :out_dim] + 0.5                       # sigmoid(x @ Ws + bs)
    j = t[:, out_dim:2 * out_dim]                        # tanh   (x @ Wt + bt)

    prod = i * j                                         # (bt*N, O)
    out = prod.reshape(bt, n_nodes, out_dim).sum(axis=1)  # torch.sum(..., dim=1)
    if use_tanh:                                         # trace-time specialization
        out = jnp.tanh(out)

    # TODO(synk): nn.Dropout in training mode needs RNG (pltpu.prng_*); eval
    # mode is identity, which is what is implemented here.
    o_ref[...] = out.astype(o_ref.dtype)


def graph_aggregation(x, w_sig, b_sig, w_tanh, b_tanh, use_tanh_activation=True):
    """x: (B, N, F); w_*: (F, O); b_*: (O,). Returns (B, O)."""
    B, N, F = x.shape
    O = w_sig.shape[1]
    Wcols = max(128, _round_up(2 * O, 128))              # lane-dense packed slab

    bt = _choose_batch_tile(B, N, F, x.dtype.itemsize)
    grid = (pl.cdiv(B, bt),)

    # Pack [0.5*Ws | Wt] into one weight slab (tiny, resident in VMEM).  The
    # padded columns [2*O, Wcols) are zero and never read back by the kernel.
    wc = jnp.zeros((F, Wcols), x.dtype)
    wc = wc.at[:, :O].set((0.5 * w_sig).astype(x.dtype))
    wc = wc.at[:, O:2 * O].set(w_tanh.astype(x.dtype))
    bc = jnp.zeros((1, Wcols), jnp.float32)
    bc = bc.at[0, :O].set(0.5 * b_sig.astype(jnp.float32))
    bc = bc.at[0, O:2 * O].set(b_tanh.astype(jnp.float32))

    # Free metadata reshape: flatten batch*nodes into the matmul M dim in the
    # wrapper so the kernel never needs an in-kernel relayout.
    x2 = x.reshape(B * N, F)

    kernel = functools.partial(_graph_agg_kernel, n_nodes=N, out_dim=O,
                               use_tanh=bool(use_tanh_activation))

    out = pl.pallas_call(
        kernel,
        out_shape=jax.ShapeDtypeStruct((B, O), x.dtype),
        grid_spec=pltpu.PrefetchScalarGridSpec(
            num_scalar_prefetch=0,
            grid=grid,
            in_specs=[
                pl.BlockSpec((bt * N, F), lambda g: (g, 0)),   # x tile, real F
                pl.BlockSpec((F, Wcols), lambda g: (0, 0)),    # packed weights
                pl.BlockSpec((1, Wcols), lambda g: (0, 0)),    # packed biases
            ],
            out_specs=pl.BlockSpec((bt, O), lambda g: (g, 0)),
        ),
        compiler_params=pltpu.CompilerParams(
            dimension_semantics=("parallel",),
            vmem_limit_bytes=48 * 1024 * 1024),                # v7x-safe cap
    )(x2, wc, bc)

    return out


def _reference(x, w_sig, b_sig, w_tanh, b_tanh, use_tanh_activation=True):
    hp = jax.lax.Precision.HIGHEST
    i = jax.nn.sigmoid(jnp.einsum("bnf,fo->bno", x, w_sig, precision=hp) + b_sig)
    j = jnp.tanh(jnp.einsum("bnf,fo->bno", x, w_tanh, precision=hp) + b_tanh)
    out = jnp.sum(i * j, axis=1)
    if use_tanh_activation:
        out = jnp.tanh(out)
    return out


if __name__ == "__main__":
    # Shapes consistent with the module: in_features=32, b_dim=18 (forced),
    # out_features=32, batch=2, num_nodes=8.
    in_features, b_dim, out_features = 32, 18, 32
    B, N = 2, 8
    F = in_features + b_dim

    key = jax.random.PRNGKey(0)
    kx, kw1, kb1, kw2, kb2 = jax.random.split(key, 5)

    # Deterministic parameter init (PyTorch Linear style U(-1/sqrt(fan_in), ...)).
    bound = 1.0 / (F ** 0.5)
    x = jax.random.normal(kx, (B, N, F), dtype=jnp.float32)
    w_sig = jax.random.uniform(kw1, (F, out_features), jnp.float32, -bound, bound)
    b_sig = jax.random.uniform(kb1, (out_features,), jnp.float32, -bound, bound)
    w_tanh = jax.random.uniform(kw2, (F, out_features), jnp.float32, -bound, bound)
    b_tanh = jax.random.uniform(kb2, (out_features,), jnp.float32, -bound, bound)

    out = graph_aggregation(x, w_sig, b_sig, w_tanh, b_tanh, use_tanh_activation=True)
    out = jax.block_until_ready(out)

    ref = _reference(x, w_sig, b_sig, w_tanh, b_tanh, use_tanh_activation=True)
    assert out.shape == (B, out_features)
    assert jnp.allclose(out, ref, atol=1e-4, rtol=1e-4), "mismatch vs reference"

    print("KERNEL_OK")
</pallas_src>

<mosaic_0001>
module attributes {stable_mosaic.version = 11 : i64} {
  func.func @_graph_agg_kernel(%arg0: i32, %arg1: memref<16x50xf32, #tpu.memory_space<vmem>>, %arg2: memref<50x128xf32, #tpu.memory_space<vmem>>, %arg3: memref<1x128xf32, #tpu.memory_space<vmem>>, %arg4: memref<2x32xf32, #tpu.memory_space<vmem>>) attributes {dimension_semantics = [#tpu.dimension_semantics<parallel>], iteration_bounds = array<i64: 1>, scalar_prefetch = 0 : i64, scratch_operands = 0 : i64, tpu.core_type = #tpu.core_type<tc>, window_params = [{transform_indices = @transform_0, window_bounds = array<i64: 16, 50>}, {pipeline_mode = #tpu.pipeline_mode<synchronous>, transform_indices = @transform_1, window_bounds = array<i64: 50, 128>}, {pipeline_mode = #tpu.pipeline_mode<synchronous>, transform_indices = @transform_2, window_bounds = array<i64: 1, 128>}, {transform_indices = @transform_3, window_bounds = array<i64: 2, 32>}]} {
    %c0 = arith.constant 0 : index
    %c0_0 = arith.constant 0 : index
    %0 = vector.load %arg1[%c0, %c0_0] : memref<16x50xf32, #tpu.memory_space<vmem>>, vector<16x50xf32>
    %c0_1 = arith.constant 0 : index
    %c0_2 = arith.constant 0 : index
    %1 = vector.load %arg2[%c0_1, %c0_2] : memref<50x128xf32, #tpu.memory_space<vmem>>, vector<50x128xf32>
    %cst = arith.constant dense<0.000000e+00> : vector<16x128xf32>
    %2 = tpu.matmul %0, %1, %cst {dimension_numbers = #tpu.dot_dimension_numbers<[1], [0], [0], [1], [0, 0, 1, 1], [], []>, precision = #tpu.contract_precision<fp32>} : vector<16x50xf32>, vector<50x128xf32>, vector<16x128xf32> -> vector<16x128xf32>
    %c0_3 = arith.constant 0 : index
    %c0_4 = arith.constant 0 : index
    %3 = vector.load %arg3[%c0_3, %c0_4] : memref<1x128xf32, #tpu.memory_space<vmem>>, vector<1x128xf32>
    %4 = vector.broadcast %3 : vector<1x128xf32> to vector<16x128xf32>
    %5 = arith.addf %2, %4 : vector<16x128xf32>
    %6 = math.tanh %5 : vector<16x128xf32>
    %7 = vector.extract_strided_slice %6 {offsets = [0, 0], sizes = [16, 32], strides = [1, 1]} : vector<16x128xf32> to vector<16x32xf32>
    %cst_5 = arith.constant 5.000000e-01 : f32
    %8 = vector.broadcast %cst_5 : f32 to vector<16x32xf32>
    %9 = arith.mulf %8, %7 : vector<16x32xf32>
    %cst_6 = arith.constant 5.000000e-01 : f32
    %10 = vector.broadcast %cst_6 : f32 to vector<16x32xf32>
    %11 = arith.addf %9, %10 : vector<16x32xf32>
    %12 = vector.extract_strided_slice %6 {offsets = [0, 32], sizes = [16, 32], strides = [1, 1]} : vector<16x128xf32> to vector<16x32xf32>
    %13 = arith.mulf %11, %12 : vector<16x32xf32>
    %14 = vector.shape_cast %13 : vector<16x32xf32> to vector<2x8x32xf32>
    %cst_7 = arith.constant dense<0.000000e+00> : vector<2x32xf32>
    %15 = vector.multi_reduction <add>, %14, %cst_7 [1] : vector<2x8x32xf32> to vector<2x32xf32>
    %16 = math.tanh %15 : vector<2x32xf32>
    %c0_8 = arith.constant 0 : index
    %c0_9 = arith.constant 0 : index
    %17 = vector.load %arg4[%c0_8, %c0_9] : memref<2x32xf32, #tpu.memory_space<vmem>>, vector<2x32xf32>
    tpu.vector_store %arg4[%c0_8, %c0_9], %16 {strides = array<i32>} : memref<2x32xf32, #tpu.memory_space<vmem>>, vector<2x32xf32>,
    return
  }
  func.func @transform_0(%arg0: i32) -> (i32, i32) {
    %c0_i32 = arith.constant 0 : i32
    %c0_i32_0 = arith.constant 0 : i32
    return %arg0, %c0_i32 : i32, i32
  }
  func.func @transform_1(%arg0: i32) -> (i32, i32) {
    %c0_i32 = arith.constant 0 : i32
    %c0_i32_0 = arith.constant 0 : i32
    %c0_i32_1 = arith.constant 0 : i32
    return %c0_i32, %c0_i32_0 : i32, i32
  }
  func.func @transform_2(%arg0: i32) -> (i32, i32) {
    %c0_i32 = arith.constant 0 : i32
    %c0_i32_0 = arith.constant 0 : i32
    %c0_i32_1 = arith.constant 0 : i32
    return %c0_i32, %c0_i32_0 : i32, i32
  }
  func.func @transform_3(%arg0: i32) -> (i32, i32) {
    %c0_i32 = arith.constant 0 : i32
    %c0_i32_0 = arith.constant 0 : i32
    return %arg0, %c0_i32 : i32, i32
  }
}

</mosaic_0001>

<bundles_post_ra>
// kernel: tpu_custom_call.1
= control target key start
LH: loop header
LB: loop body
LE: loop exit
PB: predicated region body
PF: predicated region fallthrough
CT: control target
= control target key end

     0   :  { %8 = vsyncpa [#allocation3], 0  ;;  %s1172_s0 = inlined_call_operand.hbm [shape: f32[16,50], index: 0, kind: input, shape index: {}]   ;;  %s1173_s1 = inlined_call_operand.hbm [shape: f32[50,128], index: 1, kind: input, shape index: {}]   ;;  %s1174_s2 = inlined_call_operand.vmem [shape: f32[1,128], index: 2, kind: input, shape index: {}]   ;;  %s1175_s3 = inlined_call_operand.hbm [shape: f32[2,32], index: 3, kind: output, shape index: {}]  }
   0x1   :  { %9 = vsyncpa [#allocation6], 0 }
   0x2   :  { %10 = vsyncpa [#allocation4], 0  ;;  %s1020_s12 = smov [#allocation2]   ;;  %s948_s16 = scalar_lea.hbm %s1172_s0, 256 }
   0x3   :  { %s16_s13 = sshll.u32 %s1020_s12, 4  ;;  %p949_p0 = scmp.ne.s32.totalorder %s1172_s0, %s948_s16  ;;  %s17_s13 = int_to_ptr.vmem [resolvable:$true] %s16_s13 }
   0x4   :  { %p952_p1 = scmp.lt.u32.totalorder %s948_s16, %s1172_s0 }
   0x6   :  { %p954_p2 = pnand %p952_p1, %p949_p0 }
   0x8   :  { %957 = shalt.err (!%p954_p2)
}
   0x9   :  { %s958_s21 = scalar_lea.vmem %s17_s13, 256  ;;  %p963_p4 = scmp.lt.s32.totalorder %s17_s13, %s17_s13 }
   0xa   :  { %p959_p3 = scmp.ne.s32.totalorder %s17_s13, %s958_s21  ;;  %p964_p5 = scmp.lt.s32.totalorder %s958_s21, %s958_s21 }
   0xc   :  { %p965_p6 = por %p964_p5, %p963_p4 }
   0xe   :  { %p966_p7 = pnand %p965_p6, %p959_p3 }
  0x10   :  { %969 = shalt.err (!%p966_p7)
}
  0x11   :  { %s1021_s22 = smov 128   ;;  %s1022_s23 = smov 8  }
  0x12   :  { %22 = dma.hbm_to_vmem [thread:$0]  %s1172_s0, 256, %s17_s13, [#allocation3], %s1021_s22, %s1021_s22, %s1022_s23  }
  0x13   :  { %s1023_s26 = smov [#allocation5]   ;;  %s970_s30 = scalar_lea.hbm %s1173_s1, 896 }
  0x14   :  { %s28_s27 = sshll.u32 %s1023_s26, 4  ;;  %p971_p8 = scmp.ne.s32.totalorder %s1173_s1, %s970_s30  ;;  %s29_s27 = int_to_ptr.vmem [resolvable:$true] %s28_s27 }
  0x15   :  { %p974_p9 = scmp.lt.u32.totalorder %s970_s30, %s1173_s1 }
  0x17   :  { %p976_p10 = pnand %p974_p9, %p971_p8 }
  0x19   :  { %979 = shalt.err (!%p976_p10)
}
  0x1a   :  { %s980_s8 = scalar_lea.vmem %s29_s27, 896  ;;  %p985_p12 = scmp.lt.s32.totalorder %s29_s27, %s29_s27 }
  0x1b   :  { %p981_p11 = scmp.ne.s32.totalorder %s29_s27, %s980_s8  ;;  %p986_p13 = scmp.lt.s32.totalorder %s980_s8, %s980_s8 }
  0x1d   :  { %p987_p0 = por %p986_p13, %p985_p12 }
  0x1f   :  { %p988_p1 = pnand %p987_p0, %p981_p11 }
  0x21   :  { %991 = shalt.err (!%p988_p1)
}
  0x22   :  { %34 = dma.hbm_to_vmem [thread:$0]  %s1173_s1, 896, %s29_s27, [#allocation6], %s1021_s22, %s1021_s22, %s1022_s23  }
  0x23   :  { %1014 = dma.done.wait [#allocation3], 256  }
  0x24   :  { %1015 = vsyncadd [#allocation3], 4294967040 }
  0x25   :  { %1016 = dma.done.wait [#allocation6], 896  }
  0x26   :  { %1017 = vsyncadd [#allocation6], 4294966400  ;;  %v45_v0 = vld [vmem:[#allocation5] sm:$0xff]  ;;  %v46_v1 = vld [vmem:[#allocation5 + $0x8] sm:$0xff]  ;;  %vm59_vm0 = vcmask 408576   ;;  %vm66_vm1 = vcmask 1041408  }
  0x27   :  { %v47_v2 = vld [vmem:[#allocation5 + $0x10] sm:$0xff]  ;;  %v71_v3 = vand.u32 4294901760, %v45_v0  ;;  %v74_v4 = vand.u32 4294901760, %v46_v1  ;;  %v48_v5 = vld [vmem:[#allocation5 + $0x18] sm:$0xff]  ;;  %v49_v7 = vld [vmem:[#allocation5 + $0x20] sm:$0xff]  ;;  %s1024_s11 = smov 96  }
  0x28   :  { %v77_v6 = vand.u32 4294901760, %v47_v2  ;;  %v50_v8 = vld [vmem:[#allocation5 + $0x28] sm:$0xff]  ;;  %v80_v9 = vand.u32 4294901760, %v48_v5  ;;  %v83_v10 = vand.u32 4294901760, %v49_v7  ;;  %v43_v12 = vld [vmem:[#allocation2] sm:$0xff]  ;;  %v44_v15 = vld [vmem:[#allocation2 + $0x8] sm:$0xff] }
  0x29   :  { %v86_v11 = vand.u32 4294901760, %v50_v8  ;;  %v1070_v13 = vpack.c.bf16 %v74_v4, %v71_v3  ;;  %v51_v14 = vld [vmem:[#allocation5 + $0x30] sm:$0x3]  ;;  %v61_v16 = vsel %vm59_vm0, %v43_v12, 0  ;;  %v1073_v17 = vsub.f32 %v45_v0, %v71_v3 }
  0x2a   :  { %v1075_v18 = vpack.c.bf16 %v80_v9, %v77_v6  ;;  %v64_v20 = vsel %vm59_vm0, %v44_v15, 0  ;;  %v1082_v21 = vand.u32 4294901760, %v61_v16  ;;  %v1087_v24 = vsub.f32 %v46_v1, %v74_v4 }
  0x2b   :  { %v1077_v19 = vpack.c.bf16 %v86_v11, %v83_v10  ;;  %851 = vmatprep.subr.bf16.mxu1 %v1070_v13  ;;  %887 = vmatprep.subr.bf16.mxu0 %v1070_v13  ;;  %v1084_v22 = vand.u32 4294901760, %v64_v20  ;;  %v165_v23 = vand.u32 4294901760, %v1073_v17  ;;  %v68_v25 = vsel %vm66_vm1, %v51_v14, 0 }
  0x2c   :  { %853 = vmatpush3.bf16.msra.mxu1 %v1070_v13  ;;  %889 = vmatpush3.bf16.msra.mxu0 %v1070_v13  ;;  %v1091_v26 = vsub.f32 %v47_v2, %v77_v6  ;;  %v1093_v27 = vsub.f32 %v48_v5, %v80_v9  ;;  %v1095_v28 = vsub.f32 %v49_v7, %v83_v10  ;;  %v172_v31 = vand.u32 4294901760, %v1087_v24  ;;  %v693_v5 = vld [vmem:[%s1174_s2] ss:$0 sm:$0xff]  ;;  %s1025_s2 = smov [#allocation7]  }
  0x2d   :  { %855 = vmatprep.subr.bf16.mxu1 %v1075_v18  ;;  %891 = vmatprep.subr.bf16.mxu0 %v1075_v18  ;;  %v1100_v29 = vsub.f32 %v61_v16, %v1082_v21  ;;  %v166_v30 = vsub.f32 %v1073_v17, %v165_v23  ;;  %v1105_v32 = vsub.f32 %v64_v20, %v1084_v22  ;;  %v1116_v39 = vand.u32 4294901760, %v68_v25  ;;  %s683_s12 = sshll.u32 %s1025_s2, 4  ;;  %s684_s12 = int_to_ptr.vmem [resolvable:$true] %s683_s12 }
  0x2e   :  { %v179_v33 = vand.u32 4294901760, %v1091_v26  ;;  %v186_v34 = vand.u32 4294901760, %v1093_v27  ;;  %v1109_v35 = vsub.f32 %v50_v8, %v86_v11  ;;  %v173_v37 = vsub.f32 %v1087_v24, %v172_v31  ;;  %s992_s13 = scalar_lea.vmem %s684_s12, 32  ;;  %p997_p3 = scmp.lt.s32.totalorder %s684_s12, %s684_s12 }
  0x2f   :  { %v144_v36 = vand.u32 4294901760, %v1100_v29  ;;  %v193_v38 = vand.u32 4294901760, %v1095_v28  ;;  %v154_v40 = vand.u32 4294901760, %v1105_v32  ;;  %v167_v44 = vand.u32 4294901760, %v166_v30  ;;  %p993_p2 = scmp.ne.s32.totalorder %s684_s12, %s992_s13  ;;  %p998_p4 = scmp.lt.s32.totalorder %s992_s13, %s992_s13 }
  0x30   :  { %857 = vmatpush3.bf16.msra.mxu1 %v1075_v18  ;;  %893 = vmatpush3.bf16.msra.mxu0 %v1075_v18  ;;  %v180_v41 = vsub.f32 %v1091_v26, %v179_v33  ;;  %v187_v42 = vsub.f32 %v1093_v27, %v186_v34  ;;  %v174_v45 = vand.u32 4294901760, %v173_v37  ;;  %v200_v46 = vand.u32 4294901760, %v1109_v35 }
  0x31   :  { %859 = vmatprep.subr.bf16.mxu1 %v1077_v19  ;;  %895 = vmatprep.subr.bf16.mxu0 %v1077_v19  ;;  %v145_v43 = vsub.f32 %v1100_v29, %v144_v36  ;;  %v155_v47 = vsub.f32 %v1105_v32, %v154_v40  ;;  %v194_v49 = vsub.f32 %v1095_v28, %v193_v38  ;;  %vm653_vm2 = vcmask 261120   ;;  %p999_p5 = por %p998_p4, %p997_p3 }
  0x32   :  { %813 = vmatprep.mubr.f32.mxu0 %v144_v36  ;;  %v181_v50 = vand.u32 4294901760, %v180_v41  ;;  %v188_v51 = vand.u32 4294901760, %v187_v42  ;;  %v201_v52 = vsub.f32 %v1109_v35, %v200_v46  ;;  %v206_v53 = vsub.f32 %v68_v25, %v1116_v39 }
  0x33   :  { %v146_v48 = vand.u32 4294901760, %v145_v43  ;;  %v862_v54 = vpack.c.bf16 %v174_v45, %v167_v44  ;;  %v898_v55 = vpack.c.bf16 %v172_v31, %v165_v23  ;;  %v156_v56 = vand.u32 4294901760, %v155_v47  ;;  %p1000_p6 = pnand %p999_p5, %p993_p2 }
  0x34   :  { %861 = vmatpush3.bf16.msra.mxu1 %v1077_v19  ;;  %897 = vmatpush3.bf16.msra.mxu0 %v1077_v19  ;;  %v902_v57 = vpack.c.bf16 %v186_v34, %v179_v33  ;;  %v866_v58 = vpack.c.bf16 %v188_v51, %v181_v50  ;;  %v195_v59 = vand.u32 4294901760, %v194_v49  ;;  %v202_v60 = vand.u32 4294901760, %v201_v52 }
  0x35   :  { %760 = vmatprep.subr.mxu1 %v1116_v39  ;;  %811 = vmatprep.subr.mxu0 %v1116_v39  ;;  %v207_v61 = vand.u32 4294901760, %v206_v53  ;;  %v906_v63 = vpack.c.bf16 %v200_v46, %v193_v38  ;;  %v874_v2 = vpack.c.bf16 %v1087_v24, %v1073_v17  ;;  %v878_v3 = vpack.c.bf16 %v1093_v27, %v1091_v26 }
  0x36   :  { %762 = vmatprep.mubr.f32.mxu1 %v146_v48  ;;  %v870_v62 = vpack.c.bf16 %v202_v60, %v195_v59  ;;  %v882_v4 = vpack.c.bf16 %v1109_v35, %v1095_v28  ;;  %vm672_vm3 = vcmask 1041409   ;;  %vm675_vm4 = vcmask 254976  }
  0x37   :  { %v208_v0 = vsub.f32 %v206_v53, %v207_v61 }
  0x38   :  { %761 = vmatpush3.msra.mxu1 %v1116_v39  ;;  %812 = vmatpush3.msra.mxu0 %v1116_v39 }
  0x39   :  { %863 = vmatprep.subr.bf16.mxu1 %v862_v54  ;;  %899 = vmatprep.subr.bf16.mxu0 %v898_v55  ;;  %v209_v1 = vand.u32 4294901760, %v208_v0 }
  0x3a   :  { %763 = vmatmul.mubr.f32.vlgmr.msra.gmra.mrb[0].mxu1 %v156_v56  ;;  %814 = vmatmul.mubr.f32.vlgmr.msra.gmra.mrb[0].mxu0 %v154_v40 }
  0x3b   :  { %865 = vmatpush3.bf16.msra.mxu1 %v862_v54  ;;  %901 = vmatpush3.bf16.msra.mxu0 %v898_v55 }
  0x3c   :  { %867 = vmatprep.subr.bf16.mxu1 %v866_v58  ;;  %903 = vmatprep.subr.bf16.mxu0 %v902_v57 }
  0x3d   :  { %779 = vmatprep.mubr.f32.mxu1 %v1082_v21  ;;  %830 = vmatprep.mubr.f32.mxu0 %v1082_v21 }
  0x3f   :  { %869 = vmatpush3.bf16.msra.mxu1 %v866_v58  ;;  %905 = vmatpush3.bf16.msra.mxu0 %v902_v57 }
  0x40   :  { %871 = vmatprep.subr.bf16.mxu1 %v870_v62  ;;  %907 = vmatprep.subr.bf16.mxu0 %v906_v63 }
  0x43   :  { %873 = vmatpush3.bf16.msra.mxu1 %v870_v62  ;;  %909 = vmatpush3.bf16.msra.mxu0 %v906_v63 }
  0x44   :  { %777 = vmatprep.subr.mxu1 %v209_v1  ;;  %828 = vmatprep.subr.mxu0 %v207_v61 }
  0x47   :  { %778 = vmatpush3.msra.mxu1 %v209_v1  ;;  %829 = vmatpush3.msra.mxu0 %v207_v61 }
  0x48   :  { %875 = vmatprep.subr.bf16.mxu1 %v874_v2  ;;  %911 = vmatprep.subr.bf16.mxu0 %v1070_v13 }
  0x49   :  { %780 = vmatmul.mubr.f32.vlgmr.msra.gmra.mrb[0].mxu1 %v1084_v22  ;;  %831 = vmatmul.mubr.f32.vlgmr.msra.gmra.mrb[0].mxu0 %v1084_v22 }
  0x4a   :  { %877 = vmatpush3.bf16.msra.mxu1 %v874_v2  ;;  %913 = vmatpush3.bf16.msra.mxu0 %v1070_v13 }
  0x4b   :  { %879 = vmatprep.subr.bf16.mxu1 %v878_v3  ;;  %915 = vmatprep.subr.bf16.mxu0 %v1075_v18 }
  0x4c   :  { %796 = vmatprep.mubr.f32.mxu1 %v1100_v29  ;;  %847 = vmatprep.mubr.f32.mxu0 %v1082_v21 }
  0x4e   :  { %881 = vmatpush3.bf16.msra.mxu1 %v878_v3  ;;  %917 = vmatpush3.bf16.msra.mxu0 %v1075_v18 }
  0x4f   :  { %883 = vmatprep.subr.bf16.mxu1 %v882_v4  ;;  %919 = vmatprep.subr.bf16.mxu0 %v1077_v19 }
  0x52   :  { %885 = vmatpush3.bf16.msra.mxu1 %v882_v4  ;;  %921 = vmatpush3.bf16.msra.mxu0 %v1077_v19 }
  0x53   :  { %794 = vmatprep.subr.mxu1 %v206_v53  ;;  %845 = vmatprep.subr.mxu0 %v1116_v39 }
  0x56   :  { %795 = vmatpush3.msra.mxu1 %v206_v53  ;;  %846 = vmatpush3.msra.mxu0 %v1116_v39 }
  0x57   :  { %797 = vmatmul.mubr.f32.vlgmr.msra.gmra.mrb[0].mxu1 %v1105_v32  ;;  %848 = vmatmul.mubr.f32.vlgmr.msra.gmra.mrb[0].mxu0 %v1084_v22 }
 0x12a   :  { %v798_v6 = vpop.f32.mrb[0].mxu1  ;;  %v849_v7 = vpop.f32.mrb[0].mxu0 }
 0x12b   :  { %v922_v8 = vadd.f32 %v798_v6, %v693_v5  ;;  %v356_v9 = vpop.f32.mrb[1].mxu1  ;;  %v627_v10 = vpop.f32.mrb[1].mxu0 }
 0x12c   :  { %v924_v11 = vadd.f32 %v693_v5, %v356_v9 }
 0x12d   :  { %v923_v12 = vadd.f32 %v922_v8, %v849_v7 }
 0x12e   :  { %v925_v13 = vadd.f32 %v924_v11, %v627_v10 }
 0x130   :  { %940 = vtanh.f32 %v925_v13 }
 0x131   :  { %942 = vtanh.f32 %v923_v12 }
 0x13a   :  { %v941_v14 = vpop.eup %940 }
 0x13b   :  { %645 = vrot.lane.b32.xlu0 %v941_v14, %s1024_s11  ;;  %v943_v15 = vpop.eup %942  ;;  %v639_v16 = vmul.f32 0.5, %v941_v14 }
 0x13c   :  { %v640_v18 = vmul.f32 0.5, %v943_v15 }
 0x13d   :  { %v641_v17 = vadd.f32 0.5, %v639_v16 }
 0x13e   :  { %v642_v22 = vadd.f32 0.5, %v640_v18 }
 0x13f   :  { %647 = vrot.lane.b32.xlu0 %v943_v15, %s1024_s11 }
 0x1ad   :  { %v646_v19 = vpop.permute.xlu0 %645 }
 0x1ae   :  { %v651_v20 = vmul.f32 %v646_v19, %v641_v17 }
 0x1b0   :  { %v654_v21 = vsel %vm653_vm2, %v651_v20, 0.0 }
 0x1b1   :  { %v655_v23 = vrot.slane %v654_v21, 4  ;;  %v648_v24 = vpop.permute.xlu0 %647 }
 0x1b2   :  { %v652_v25 = vmul.f32 %v648_v24, %v642_v22 }
 0x1b3   :  { %v656_v26 = vadd.f32 %v655_v23, %v654_v21 }
 0x1b4   :  { %v661_v27 = vsel %vm653_vm2, %v652_v25, 0.0 }
 0x1b5   :  { %v657_v28 = vrot.slane %v656_v26, 2  ;;  %v662_v29 = vrot.slane %v661_v27, 4 }
 0x1b7   :  { %v658_v30 = vadd.f32 %v657_v28, %v656_v26  ;;  %v663_v31 = vadd.f32 %v662_v29, %v661_v27 }
 0x1b9   :  { %v659_v32 = vrot.slane %v658_v30, 1  ;;  %v664_v33 = vrot.slane %v663_v31, 2 }
 0x1bb   :  { %v665_v34 = vadd.f32 %v664_v33, %v663_v31  ;;  %v660_v35 = vadd.f32 %v659_v32, %v658_v30 }
 0x1bd   :  { %v666_v36 = vrot.slane %v665_v34, 1  ;;  %944 = vtanh.f32 %v660_v35 }
 0x1bf   :  { %v667_v37 = vadd.f32 %v666_v36, %v665_v34 }
 0x1c1   :  { %946 = vtanh.f32 %v667_v37 }
 0x1c7   :  { %v945_v38 = vpop.eup %944 }
 0x1cb   :  { %v947_v39 = vpop.eup %946 }
 0x1cc   :  { %v673_v40 = vsel %vm672_vm3, %v947_v39, %v945_v38 }
 0x1cd   :  { %676 = vst.msk [vmem:[#allocation7] sm:$0x3] %vm675_vm4, %v673_v40 }
 0x1ce   :  { %1003 = shalt.err (!%p1000_p6)
}
 0x1cf   :  { %s1004_s16 = scalar_lea.hbm %s1175_s3, 32 }
 0x1d0   :  { %p1005_p7 = scmp.ne.s32.totalorder %s1175_s3, %s1004_s16  ;;  %p1008_p8 = scmp.lt.u32.totalorder %s1004_s16, %s1175_s3 }
 0x1d2   :  { %p1010_p9 = pnand %p1008_p8, %p1005_p7 }
 0x1d4   :  { %1013 = shalt.err (!%p1010_p9)
}
 0x1d5   :  { %686 = dma.vmem_to_hbm [thread:$0]  %s684_s12, 32, %s1175_s3, [#allocation4]  }
 0x1d6   :  { %1018 = dma.done.wait [#allocation4], 32  }
 0x1d7   :  { %1019 = vsyncadd [#allocation4], 4294967264 }
 0x1d8   :  { %690 = vsyncpa [#allocation3], 1 }
 0x1d9   :  { %691 = vsyncpa [#allocation6], 1 }
 0x1da   :  { %692 = vsyncpa [#allocation4], 1 }

</bundles_post_ra>
